<compile_context>
chip_gen: v7x
topology: tpu7x:2x2x1
jax: 0.10.0
libtpu: 0.0.40
codegen_flags: <defaults>
</compile_context>

<pallas_src>
import functools

import jax
import jax.numpy as jnp
from jax import lax
from jax.experimental import pallas as pl
from jax.experimental.pallas import tpu as pltpu


def _round_up(v, m):
    return (v + m - 1) // m * m


def _mlp_kernel(x_ref, bidx_ref, w1x_ref, uw1_ref, w2_ref, b2_ref,
                w3_ref, b3_ref, o_ref):
    rows = x_ref.shape[0]
    ngraphs = uw1_ref.shape[0]

    # In-kernel gather of (u @ W1u + b1)[batch] as an exact one-hot row-select
    # on the MXU (K = num_graphs, values are exactly 0/1 so the select is
    # bit-exact in f32).
    onehot = (lax.broadcasted_iota(jnp.int32, (rows, ngraphs), 1)
              == bidx_ref[...]).astype(jnp.float32)

    # Layer 1: fused concat -> two matmuls accumulating into one f32 tile,
    # bias already folded into uw1, ReLU in f32.
    h1 = jnp.dot(x_ref[...], w1x_ref[...], preferred_element_type=jnp.float32)
    h1 = h1 + jnp.dot(onehot, uw1_ref[...], preferred_element_type=jnp.float32)
    h1 = jnp.maximum(h1, 0.0).astype(w2_ref.dtype)       # bf16 back to the MXU

    h2 = jnp.dot(h1, w2_ref[...], preferred_element_type=jnp.float32)
    h2 = jnp.maximum(h2 + b2_ref[...], 0.0).astype(w3_ref.dtype)

    out = jnp.dot(h2, w3_ref[...], preferred_element_type=jnp.float32)
    o_ref[...] = (out + b3_ref[...]).astype(o_ref.dtype)


@functools.partial(jax.jit, static_argnames=("tile_n", "compute_dtype"))
def global_model_forward(x, u, batch, params, *, tile_n=512,
                         compute_dtype=jnp.bfloat16):
    """x: [N, D], u: [B, D], batch: [N] int graph ids -> [N, embed_dim]."""
    w1, b1, w2, b2, w3, b3 = params
    n, d = x.shape
    nb = u.shape[0]
    h = w1.shape[1]
    e = w3.shape[1]
    hp = _round_up(h, 128)
    ep = _round_up(e, 128)

    cdt = compute_dtype
    csize = jnp.dtype(cdt).itemsize
    osize = x.dtype.itemsize

    # Split W1 into x / u halves (fused concat); pad feature dims to 128.
    w1x = jnp.pad(w1[:d, :], ((0, 0), (0, hp - h))).astype(cdt)
    w1u = jnp.pad(w1[d:, :], ((0, 0), (0, hp - h))).astype(cdt)
    b1p = jnp.pad(b1, ((0, 0), (0, hp - h))).astype(jnp.float32)
    # Per-graph layer-1 contribution (one tiny [B, hp] matmul), bias folded in.
    uw1 = jnp.dot(u.astype(cdt), w1u, preferred_element_type=jnp.float32) + b1p
    w2p = jnp.pad(w2, ((0, hp - h), (0, hp - h))).astype(cdt)
    b2p = jnp.pad(b2, ((0, 0), (0, hp - h))).astype(jnp.float32)
    w3p = jnp.pad(w3, ((0, hp - h), (0, ep - e))).astype(cdt)
    b3p = jnp.pad(b3, ((0, 0), (0, ep - e))).astype(jnp.float32)

    xr = x.astype(cdt)
    bidx = batch.astype(jnp.int32).reshape(n, 1)

    # Rows are independent, so Pallas block padding of the last partial tile
    # is harmless (OOB rows are dropped on the store).
    tile_rows = min(tile_n, _round_up(n, 8))
    grid = (pl.cdiv(n, tile_rows),)

    const2d = lambda a: pl.BlockSpec(a.shape, lambda i: (0, 0))

    # VMEM budget: double-buffered row/idx/out tiles + weights + f32
    # intermediates (incl. the one-hot tile), with slack; capped < 64 MiB.
    bp = _round_up(nb, 128)
    io_bytes = 2 * tile_rows * (d * csize + 128 * 4 + ep * osize)
    w_bytes = 2 * ((d * hp + hp * hp + hp * ep) * csize
                   + (nb * hp + hp + ep) * 4)
    act_bytes = tile_rows * (bp * 4 + 6 * hp * 4 + ep * 4)
    vmem_limit = int(min(56 * 2**20,
                         max(32 * 2**20, 2 * (io_bytes + w_bytes + act_bytes))))

    cost = pl.CostEstimate(
        flops=2 * n * (d * h + nb * h + h * h + h * e),
        transcendentals=0,
        bytes_accessed=int(n * (d * csize + 4 + ep * osize)
                           + (d * hp + hp * hp + hp * ep) * csize
                           + nb * hp * 4),
    )

    out_padded = pl.pallas_call(
        _mlp_kernel,
        out_shape=jax.ShapeDtypeStruct((n, ep), x.dtype),
        grid_spec=pltpu.PrefetchScalarGridSpec(
            num_scalar_prefetch=0,
            grid=grid,
            in_specs=[
                pl.BlockSpec((tile_rows, d), lambda i: (i, 0)),   # x rows
                pl.BlockSpec((tile_rows, 1), lambda i: (i, 0)),   # batch ids
                const2d(w1x), const2d(uw1),
                const2d(w2p), const2d(b2p),
                const2d(w3p), const2d(b3p),
            ],
            out_specs=pl.BlockSpec((tile_rows, ep), lambda i: (i, 0)),
        ),
        compiler_params=pltpu.CompilerParams(
            dimension_semantics=("parallel",),
            vmem_limit_bytes=vmem_limit),
        cost_estimate=cost,
    )(xr, bidx, w1x, uw1, w2p, b2p, w3p, b3p)

    return out_padded if ep == e else out_padded[:, :e]


def init_params(key, input_dim, hidden_dim, embed_dim, dtype=jnp.float32):
    """Deterministic init matching the module's shapes.
    Weights: xavier_normal (as in init_weights); biases: uniform(-1/sqrt(fan_in), ..)
    like PyTorch's default Linear bias init. Stored as [in, out]."""
    def xavier_normal(k, fan_in, fan_out):
        std = (2.0 / (fan_in + fan_out)) ** 0.5
        return std * jax.random.normal(k, (fan_in, fan_out), dtype)

    def bias(k, fan_in, fan_out):
        bound = 1.0 / (fan_in ** 0.5)
        return jax.random.uniform(k, (1, fan_out), dtype, -bound, bound)

    ks = jax.random.split(key, 6)
    in2 = input_dim * 2
    w1 = xavier_normal(ks[0], in2, hidden_dim)
    b1 = bias(ks[1], in2, hidden_dim)
    w2 = xavier_normal(ks[2], hidden_dim, hidden_dim)
    b2 = bias(ks[3], hidden_dim, hidden_dim)
    w3 = xavier_normal(ks[4], hidden_dim, embed_dim)
    b3 = bias(ks[5], hidden_dim, embed_dim)
    return (w1, b1, w2, b2, w3, b3)


def reference_forward(x, u, batch, params, compute_dtype=jnp.float32):
    """Pure-JAX reference; compute_dtype mirrors the kernel's matmul policy."""
    w1, b1, w2, b2, w3, b3 = params
    cdt = compute_dtype
    xc = jnp.concatenate([x, u[batch]], axis=1).astype(cdt)
    h1 = jnp.maximum(
        jnp.dot(xc, w1.astype(cdt), preferred_element_type=jnp.float32) + b1, 0.0)
    h2 = jnp.maximum(
        jnp.dot(h1.astype(cdt), w2.astype(cdt),
                preferred_element_type=jnp.float32) + b2, 0.0)
    return jnp.dot(h2.astype(cdt), w3.astype(cdt),
                   preferred_element_type=jnp.float32) + b3


if __name__ == "__main__":
    input_dim, hidden_dim, embed_dim = 4, 32, 16
    num_nodes, num_graphs = 8, 2

    key = jax.random.PRNGKey(0)
    kx, ku, kb, kp = jax.random.split(key, 4)
    x = jax.random.normal(kx, (num_nodes, input_dim), jnp.float32)
    u = jax.random.normal(ku, (num_graphs, input_dim), jnp.float32)
    batch = jax.random.randint(kb, (num_nodes,), 0, num_graphs, jnp.int32)

    params = init_params(kp, input_dim, hidden_dim, embed_dim)

    out = global_model_forward(x, u, batch, params)
    out = jax.block_until_ready(out)
    assert out.shape == (num_nodes, embed_dim)

    # Tight check against a reference with the same bf16-in / f32-accumulate
    # policy (differences are accumulation-order / one-ulp rounding only).
    ref_bf16 = reference_forward(x, u, batch, params, compute_dtype=jnp.bfloat16)
    assert jnp.allclose(out, ref_bf16, atol=5e-3, rtol=5e-3)

    # Loose sanity check against the full-f32 reference (bf16 quantization).
    ref_f32 = reference_forward(x, u, batch, params, compute_dtype=jnp.float32)
    assert jnp.allclose(out, ref_f32, atol=1e-1, rtol=1e-1)

    print("KERNEL_OK")
</pallas_src>

<mosaic_0001>
module attributes {stable_mosaic.version = 11 : i64} {
  func.func @_mlp_kernel(%arg0: i32, %arg1: memref<8x4xbf16, #tpu.memory_space<vmem>>, %arg2: memref<8x1xi32, #tpu.memory_space<vmem>>, %arg3: memref<4x128xbf16, #tpu.memory_space<vmem>>, %arg4: memref<2x128xf32, #tpu.memory_space<vmem>>, %arg5: memref<128x128xbf16, #tpu.memory_space<vmem>>, %arg6: memref<1x128xf32, #tpu.memory_space<vmem>>, %arg7: memref<128x128xbf16, #tpu.memory_space<vmem>>, %arg8: memref<1x128xf32, #tpu.memory_space<vmem>>, %arg9: memref<8x128xf32, #tpu.memory_space<vmem>>) attributes {dimension_semantics = [#tpu.dimension_semantics<parallel>], iteration_bounds = array<i64: 1>, scalar_prefetch = 0 : i64, scratch_operands = 0 : i64, tpu.core_type = #tpu.core_type<tc>, window_params = [{transform_indices = @transform_0, window_bounds = array<i64: 8, 4>}, {transform_indices = @transform_1, window_bounds = array<i64: 8, 1>}, {pipeline_mode = #tpu.pipeline_mode<synchronous>, transform_indices = @transform_2, window_bounds = array<i64: 4, 128>}, {pipeline_mode = #tpu.pipeline_mode<synchronous>, transform_indices = @transform_3, window_bounds = array<i64: 2, 128>}, {pipeline_mode = #tpu.pipeline_mode<synchronous>, transform_indices = @transform_4, window_bounds = array<i64: 128, 128>}, {pipeline_mode = #tpu.pipeline_mode<synchronous>, transform_indices = @transform_5, window_bounds = array<i64: 1, 128>}, {pipeline_mode = #tpu.pipeline_mode<synchronous>, transform_indices = @transform_6, window_bounds = array<i64: 128, 128>}, {pipeline_mode = #tpu.pipeline_mode<synchronous>, transform_indices = @transform_7, window_bounds = array<i64: 1, 128>}, {transform_indices = @transform_8, window_bounds = array<i64: 8, 128>}]} {
    %0 = tpu.iota {dimensions = array<i32: 1>} : vector<8x2xi32>
    %c0 = arith.constant 0 : index
    %c0_0 = arith.constant 0 : index
    %1 = vector.load %arg2[%c0, %c0_0] : memref<8x1xi32, #tpu.memory_space<vmem>>, vector<8x1xi32>
    %2 = vector.broadcast %1 : vector<8x1xi32> to vector<8x2xi32>
    %3 = arith.cmpi eq, %0, %2 : vector<8x2xi32>
    %4 = arith.extui %3 : vector<8x2xi1> to vector<8x2xi32>
    %5 = arith.sitofp %4 : vector<8x2xi32> to vector<8x2xf32>
    %c0_1 = arith.constant 0 : index
    %c0_2 = arith.constant 0 : index
    %6 = vector.load %arg1[%c0_1, %c0_2] : memref<8x4xbf16, #tpu.memory_space<vmem>>, vector<8x4xbf16>
    %c0_3 = arith.constant 0 : index
    %c0_4 = arith.constant 0 : index
    %7 = vector.load %arg3[%c0_3, %c0_4] : memref<4x128xbf16, #tpu.memory_space<vmem>>, vector<4x128xbf16>
    %cst = arith.constant dense<0.000000e+00> : vector<8x128xf32>
    %8 = tpu.matmul %6, %7, %cst {dimension_numbers = #tpu.dot_dimension_numbers<[1], [0], [0], [1], [0, 0, 1, 1], [], []>} : vector<8x4xbf16>, vector<4x128xbf16>, vector<8x128xf32> -> vector<8x128xf32>
    %c0_5 = arith.constant 0 : index
    %c0_6 = arith.constant 0 : index
    %9 = vector.load %arg4[%c0_5, %c0_6] : memref<2x128xf32, #tpu.memory_space<vmem>>, vector<2x128xf32>
    %cst_7 = arith.constant dense<0.000000e+00> : vector<8x128xf32>
    %10 = tpu.matmul %5, %9, %cst_7 {dimension_numbers = #tpu.dot_dimension_numbers<[1], [0], [0], [1], [0, 0, 1, 1], [], []>} : vector<8x2xf32>, vector<2x128xf32>, vector<8x128xf32> -> vector<8x128xf32>
    %11 = arith.addf %8, %10 : vector<8x128xf32>
    %cst_8 = arith.constant 0.000000e+00 : f32
    %12 = vector.broadcast %cst_8 : f32 to vector<8x128xf32>
    %13 = arith.maximumf %11, %12 : vector<8x128xf32>
    %14 = arith.truncf %13 : vector<8x128xf32> to vector<8x128xbf16>
    %c0_9 = arith.constant 0 : index
    %c0_10 = arith.constant 0 : index
    %15 = vector.load %arg5[%c0_9, %c0_10] : memref<128x128xbf16, #tpu.memory_space<vmem>>, vector<128x128xbf16>
    %cst_11 = arith.constant dense<0.000000e+00> : vector<8x128xf32>
    %16 = tpu.matmul %14, %15, %cst_11 {dimension_numbers = #tpu.dot_dimension_numbers<[1], [0], [0], [1], [0, 0, 1, 1], [], []>} : vector<8x128xbf16>, vector<128x128xbf16>, vector<8x128xf32> -> vector<8x128xf32>
    %c0_12 = arith.constant 0 : index
    %c0_13 = arith.constant 0 : index
    %17 = vector.load %arg6[%c0_12, %c0_13] : memref<1x128xf32, #tpu.memory_space<vmem>>, vector<1x128xf32>
    %18 = vector.broadcast %17 : vector<1x128xf32> to vector<8x128xf32>
    %19 = arith.addf %16, %18 : vector<8x128xf32>
    %cst_14 = arith.constant 0.000000e+00 : f32
    %20 = vector.broadcast %cst_14 : f32 to vector<8x128xf32>
    %21 = arith.maximumf %19, %20 : vector<8x128xf32>
    %22 = arith.truncf %21 : vector<8x128xf32> to vector<8x128xbf16>
    %c0_15 = arith.constant 0 : index
    %c0_16 = arith.constant 0 : index
    %23 = vector.load %arg7[%c0_15, %c0_16] : memref<128x128xbf16, #tpu.memory_space<vmem>>, vector<128x128xbf16>
    %cst_17 = arith.constant dense<0.000000e+00> : vector<8x128xf32>
    %24 = tpu.matmul %22, %23, %cst_17 {dimension_numbers = #tpu.dot_dimension_numbers<[1], [0], [0], [1], [0, 0, 1, 1], [], []>} : vector<8x128xbf16>, vector<128x128xbf16>, vector<8x128xf32> -> vector<8x128xf32>
    %c0_18 = arith.constant 0 : index
    %c0_19 = arith.constant 0 : index
    %25 = vector.load %arg8[%c0_18, %c0_19] : memref<1x128xf32, #tpu.memory_space<vmem>>, vector<1x128xf32>
    %26 = vector.broadcast %25 : vector<1x128xf32> to vector<8x128xf32>
    %27 = arith.addf %24, %26 : vector<8x128xf32>
    %c0_20 = arith.constant 0 : index
    %c0_21 = arith.constant 0 : index
    %28 = vector.load %arg9[%c0_20, %c0_21] : memref<8x128xf32, #tpu.memory_space<vmem>>, vector<8x128xf32>
    tpu.vector_store %arg9[%c0_20, %c0_21], %27 {strides = array<i32>} : memref<8x128xf32, #tpu.memory_space<vmem>>, vector<8x128xf32>,
    return
  }
  func.func @transform_0(%arg0: i32) -> (i32, i32) {
    %c0_i32 = arith.constant 0 : i32
    %c0_i32_0 = arith.constant 0 : i32
    return %arg0, %c0_i32 : i32, i32
  }
  func.func @transform_1(%arg0: i32) -> (i32, i32) {
    %c0_i32 = arith.constant 0 : i32
    %c0_i32_0 = arith.constant 0 : i32
    return %arg0, %c0_i32 : i32, i32
  }
  func.func @transform_2(%arg0: i32) -> (i32, i32) {
    %c0_i32 = arith.constant 0 : i32
    %c0_i32_0 = arith.constant 0 : i32
    %c0_i32_1 = arith.constant 0 : i32
    return %c0_i32, %c0_i32_0 : i32, i32
  }
  func.func @transform_3(%arg0: i32) -> (i32, i32) {
    %c0_i32 = arith.constant 0 : i32
    %c0_i32_0 = arith.constant 0 : i32
    %c0_i32_1 = arith.constant 0 : i32
    return %c0_i32, %c0_i32_0 : i32, i32
  }
  func.func @transform_4(%arg0: i32) -> (i32, i32) {
    %c0_i32 = arith.constant 0 : i32
    %c0_i32_0 = arith.constant 0 : i32
    %c0_i32_1 = arith.constant 0 : i32
    return %c0_i32, %c0_i32_0 : i32, i32
  }
  func.func @transform_5(%arg0: i32) -> (i32, i32) {
    %c0_i32 = arith.constant 0 : i32
    %c0_i32_0 = arith.constant 0 : i32
    %c0_i32_1 = arith.constant 0 : i32
    return %c0_i32, %c0_i32_0 : i32, i32
  }
  func.func @transform_6(%arg0: i32) -> (i32, i32) {
    %c0_i32 = arith.constant 0 : i32
    %c0_i32_0 = arith.constant 0 : i32
    %c0_i32_1 = arith.constant 0 : i32
    return %c0_i32, %c0_i32_0 : i32, i32
  }
  func.func @transform_7(%arg0: i32) -> (i32, i32) {
    %c0_i32 = arith.constant 0 : i32
    %c0_i32_0 = arith.constant 0 : i32
    %c0_i32_1 = arith.constant 0 : i32
    return %c0_i32, %c0_i32_0 : i32, i32
  }
  func.func @transform_8(%arg0: i32) -> (i32, i32) {
    %c0_i32 = arith.constant 0 : i32
    %c0_i32_0 = arith.constant 0 : i32
    return %arg0, %c0_i32 : i32, i32
  }
}

</mosaic_0001>

<bundles_post_ra>
// kernel: global_model_forward.1
= control target key start
LH: loop header
LB: loop body
LE: loop exit
PB: predicated region body
PF: predicated region fallthrough
CT: control target
= control target key end

     0   :  { %vm47_vm0 = vcmask 1041408   ;;  %v549_v2 = vmov 0   ;;  %v550_v3 = vmov 0.0   ;;  %vm121_vm1 = vcmask 31744   ;;  %s703_s0 = inlined_call_operand.vmem [shape: bf16[8,4], index: 0, kind: input, shape index: {}]   ;;  %s704_s1 = inlined_call_operand.vmem [shape: s32[8,1], index: 1, kind: input, shape index: {}]   ;;  %s705_s2 = inlined_call_operand.vmem [shape: bf16[4,128], index: 2, kind: input, shape index: {}]   ;;  %s706_s3 = inlined_call_operand.vmem [shape: f32[2,128], index: 3, kind: input, shape index: {}]   ;;  %s707_s4 = inlined_call_operand.vmem [shape: bf16[128,128], index: 4, kind: input, shape index: {}]   ;;  %s708_s5 = inlined_call_operand.vmem [shape: f32[1,128], index: 5, kind: input, shape index: {}]   ;;  %s709_s6 = inlined_call_operand.vmem [shape: bf16[128,128], index: 6, kind: input, shape index: {}]   ;;  %s710_s7 = inlined_call_operand.vmem [shape: f32[1,128], index: 7, kind: input, shape index: {}]   ;;  %s711_s8 = inlined_call_operand.hbm [shape: f32[8,128], index: 8, kind: output, shape index: {}]  }
   0x1   :  { %v33_v0 = vld [vmem:[%s704_s1] sm:$0xff]  ;;  %508 = vset.pattern.permute.xlu0 %v549_v2  ;;  %458 = vmatprep.subr.bf16.mxu1 %v550_v3  ;;  %vm551_vm2 = vmmov 0  }
   0x2   :  { %v41_v1 = vld [vmem:[%s705_s2] sm:$0x3]  ;;  %35 = vperm.xlu0 %508, %v33_v0   ;;  %460 = vmatprep.mubr.msk.bf16.mxu1 %vm551_vm2, %v550_v3 }
   0x3   :  { %v126_v4 = vsel %vm47_vm0, %v41_v1, 0  ;;  %v40_v5 = vld [vmem:[%s703_s0] sm:$0xf]  ;;  %453 = vmatprep.subr.mxu0 %v550_v3  ;;  %455 = vmatprep.mubr.msk.f32.mxu0 %vm551_vm2, %v550_v3 }
   0x4   :  { %459 = vmatpush3.bf16.msra.mxu1 %v126_v4  ;;  %v42_v6 = vld [vmem:[%s706_s3] sm:$0x3] }
   0x5   :  { %454 = vmatpush3.msk.msra.mxu0 %vm47_vm0, %v42_v6  ;;  %484 = vmatprep.subr.bf16.mxu1 %v550_v3 }
   0x6   :  { %464 = vmatprep.subr.bf16.mxu0 %v550_v3 }
   0x7   :  { %461 = vmatmul.mubr.msk.bf16.vlgmr.msra.gmra.mrb[0].mxu1 %vm121_vm1, %v40_v5 }
   0x8   :  { %500 = vmatprep.mubr.msk.bf16.mxu1 %vm551_vm2, %v550_v3 }
   0x9   :  { %13 = vsyncpa [#allocation3], 0  ;;  %v31_v7 = vlaneseq  ;;  %vm43_vm3 = vcmask 15360   ;;  %v509_v10 = vld [vmem:[%s707_s4] sm:$0xff]   ;;  %v510_v12 = vld [vmem:[%s707_s4 + $0x8] sm:$0xff]   ;;  %s552_s18 = smov [#allocation2]  }
   0xa   :  { %v511_v13 = vld [vmem:[%s707_s4 + $0x10] sm:$0xff]   ;;  %v512_v14 = vld [vmem:[%s707_s4 + $0x18] sm:$0xff]   ;;  %v513_v15 = vld [vmem:[%s707_s4 + $0x20] sm:$0xff]   ;;  %s401_s19 = sshll.u32 %s552_s18, 4  ;;  %s402_s19 = int_to_ptr.vmem [resolvable:$true] %s401_s19 }
   0xb   :  { %v32_v8 = vand.u32 127, %v31_v7  ;;  %v514_v16 = vld [vmem:[%s707_s4 + $0x28] sm:$0xff]   ;;  %v515_v17 = vld [vmem:[%s707_s4 + $0x30] sm:$0xff]   ;;  %v516_v20 = vld [vmem:[%s707_s4 + $0x38] sm:$0xff]   ;;  %p530_p1 = scmp.lt.s32.totalorder %s402_s19, %s402_s19 }
   0xc   :  { %v517_v23 = vld [vmem:[%s709_s6] sm:$0xff]   ;;  %v518_v24 = vld [vmem:[%s709_s6 + $0x8] sm:$0xff]   ;;  %v519_v25 = vld [vmem:[%s709_s6 + $0x10] sm:$0xff]  }
   0xd   :  { %485 = vmatpush3.bf16.msra.mxu1 %v517_v23  ;;  %v520_v26 = vld [vmem:[%s709_s6 + $0x18] sm:$0xff]   ;;  %v521_v27 = vld [vmem:[%s709_s6 + $0x20] sm:$0xff]   ;;  %v522_v28 = vld [vmem:[%s709_s6 + $0x28] sm:$0xff]  }
   0xe   :  { %486 = vmatprep.subr.bf16.mxu1 %v550_v3  ;;  %v523_v34 = vld [vmem:[%s709_s6 + $0x30] sm:$0xff]   ;;  %v524_v35 = vld [vmem:[%s709_s6 + $0x38] sm:$0xff]   ;;  %v413_v36 = vld [vmem:[%s708_s5] ss:$0 sm:$0xff]  ;;  %s525_s5 = scalar_lea.vmem %s402_s19, 128 }
   0xf   :  { %v422_v44 = vld [vmem:[%s710_s7] ss:$0 sm:$0xff]  ;;  %p526_p0 = scmp.ne.s32.totalorder %s402_s19, %s525_s5  ;;  %p531_p2 = scmp.lt.s32.totalorder %s525_s5, %s525_s5 }
  0x11   :  { %487 = vmatpush3.bf16.msra.mxu1 %v518_v24  ;;  %p532_p3 = por %p531_p2, %p530_p1 }
  0x12   :  { %488 = vmatprep.subr.bf16.mxu1 %v550_v3 }
  0x13   :  { %p533_p4 = pnand %p532_p3, %p526_p0 }
  0x15   :  { %489 = vmatpush3.bf16.msra.mxu1 %v519_v25 }
  0x16   :  { %490 = vmatprep.subr.bf16.mxu1 %v550_v3 }
  0x19   :  { %491 = vmatpush3.bf16.msra.mxu1 %v520_v26 }
  0x1a   :  { %492 = vmatprep.subr.bf16.mxu1 %v550_v3 }
  0x1d   :  { %493 = vmatpush3.bf16.msra.mxu1 %v521_v27 }
  0x1e   :  { %494 = vmatprep.subr.bf16.mxu1 %v550_v3 }
  0x21   :  { %495 = vmatpush3.bf16.msra.mxu1 %v522_v28 }
  0x22   :  { %496 = vmatprep.subr.bf16.mxu1 %v550_v3 }
  0x25   :  { %497 = vmatpush3.bf16.msra.mxu1 %v523_v34 }
  0x26   :  { %498 = vmatprep.subr.bf16.mxu1 %v550_v3 }
  0x29   :  { %499 = vmatpush3.bf16.msra.mxu1 %v524_v35 }
  0x81   :  { %v36_v9 = vpop.permute.xlu0 %35 }
  0x82   :  { %vm37_vm4 = vcmp.eq.s32.totalorder %v32_v8, %v36_v9 }
  0x83   :  { %v409_v11 = vsel %vm37_vm4, 1.0, %v550_v3 }
  0x84   :  { %456 = vmatmul.mubr.msk.f32.vlgmr.msra.gmra.mrb[0].mxu0 %vm43_vm3, %v409_v11 }
  0x85   :  { %465 = vmatpush3.bf16.msra.mxu0 %v509_v10  ;;  %480 = vmatprep.mubr.msk.bf16.mxu0 %vm551_vm2, %v550_v3 }
  0x86   :  { %466 = vmatprep.subr.bf16.mxu0 %v550_v3 }
  0x89   :  { %467 = vmatpush3.bf16.msra.mxu0 %v510_v12 }
  0x8a   :  { %468 = vmatprep.subr.bf16.mxu0 %v550_v3 }
  0x8d   :  { %469 = vmatpush3.bf16.msra.mxu0 %v511_v13 }
  0x8e   :  { %470 = vmatprep.subr.bf16.mxu0 %v550_v3 }
  0x91   :  { %471 = vmatpush3.bf16.msra.mxu0 %v512_v14 }
  0x92   :  { %472 = vmatprep.subr.bf16.mxu0 %v550_v3 }
  0x95   :  { %473 = vmatpush3.bf16.msra.mxu0 %v513_v15 }
  0x96   :  { %474 = vmatprep.subr.bf16.mxu0 %v550_v3 }
  0x99   :  { %475 = vmatpush3.bf16.msra.mxu0 %v514_v16 }
  0x9a   :  { %476 = vmatprep.subr.bf16.mxu0 %v550_v3 }
  0x9d   :  { %477 = vmatpush3.bf16.msra.mxu0 %v515_v17 }
  0x9e   :  { %478 = vmatprep.subr.bf16.mxu0 %v550_v3 }
  0xa1   :  { %479 = vmatpush3.bf16.msra.mxu0 %v516_v20 }
  0xda   :  { %v162_v18 = vpop.f32.mrb[0].mxu1 }
  0xdb   :  { %v462_v19 = vpop.f32.mrb[1].mxu1 }
  0xdc   :  { %v165_v21 = vpop.f32.mrb[2].mxu1 }
  0xdd   :  { %v463_v22 = vpop.f32.mrb[3].mxu1 }
 0x157   :  { %v117_v29 = vpop.f32.mrb[0].mxu0 }
 0x158   :  { %v163_v30 = vadd.f32 %v162_v18, %v117_v29  ;;  %v457_v31 = vpop.f32.mrb[1].mxu0 }
 0x15a   :  { %v168_v32 = vmax.f32 %v163_v30, 0.0 }
 0x15c   :  { %v169_v33 = vpack.c.bf16 %v168_v32, %v168_v32 }
 0x15e   :  { %481 = vmatmul.mubr.bf16.vlgmr.msra.gmra.mrb[4].mxu0 %v169_v33 }
 0x231   :  { %v275_v37 = vpop.f32.mrb[4].mxu0 }
 0x232   :  { %v276_v38 = vadd.f32 %v413_v36, %v275_v37  ;;  %v482_v39 = vpop.f32.mrb[5].mxu0 }
 0x233   :  { %v278_v40 = vpop.f32.mrb[6].mxu0 }
 0x234   :  { %v281_v41 = vmax.f32 %v276_v38, 0.0  ;;  %v483_v42 = vpop.f32.mrb[7].mxu0 }
 0x236   :  { %v282_v43 = vpack.c.bf16 %v281_v41, %v281_v41 }
 0x238   :  { %501 = vmatmul.mubr.bf16.vlgmr.msra.gmra.mrb[4].mxu1 %v282_v43 }
 0x30b   :  { %v388_v45 = vpop.f32.mrb[4].mxu1 }
 0x30c   :  { %v389_v46 = vadd.f32 %v422_v44, %v388_v45  ;;  %v502_v47 = vpop.f32.mrb[5].mxu1 }
 0x30d   :  { %v391_v48 = vpop.f32.mrb[6].mxu1 }
 0x30e   :  { %394 = vst [vmem:[#allocation2] sm:$0xff] %v389_v46  ;;  %v503_v49 = vpop.f32.mrb[7].mxu1 }
 0x30f   :  { %536 = shalt.err (!%p533_p4)
}
 0x310   :  { %s537_s7 = scalar_lea.hbm %s711_s8, 128 }
 0x311   :  { %p538_p5 = scmp.ne.s32.totalorder %s711_s8, %s537_s7  ;;  %p541_p6 = scmp.lt.u32.totalorder %s537_s7, %s711_s8 }
 0x313   :  { %p543_p7 = pnand %p541_p6, %p538_p5 }
 0x315   :  { %546 = shalt.err (!%p543_p7)
}
 0x316   :  { %404 = dma.vmem_to_hbm [thread:$0]  %s402_s19, 128, %s711_s8, [#allocation3]  }
 0x317   :  { %547 = dma.done.wait [#allocation3], 128  }
 0x318   :  { %548 = vsyncadd [#allocation3], 4294967168 }
 0x319   :  { %408 = vsyncpa [#allocation3], 1 }

</bundles_post_ra>
